<compile_context>
chip_gen: v7x
topology: tpu7x:2x2x1
jax: 0.10.0
libtpu: 0.0.40
codegen_flags: <defaults>
</compile_context>

<pallas_src>
import functools
import math

import jax
import jax.numpy as jnp
from jax.experimental import pallas as pl
from jax.experimental.pallas import tpu as pltpu


DEFAULT_TM = 512          # dst-row tile
DEFAULT_TK = 512          # src-node reduction tile
VMEM_LIMIT = 32 * 1024 * 1024


def _round_up(x, m):
    return (x + m - 1) // m * m


# ----------------------------------------------------------------------------
# Kernel 1: projection + source-node norm scaling:  z = (h @ W) * norm
# ----------------------------------------------------------------------------
def _proj_kernel(x_ref, w_ref, nsrc_ref, z_ref):
    z = jnp.dot(x_ref[...], w_ref[...], preferred_element_type=jnp.float32)
    z_ref[...] = (z * nsrc_ref[...]).astype(z_ref.dtype)


# ----------------------------------------------------------------------------
# Kernel 2: weighted aggregation + dst norm + bias + ReLU:
#           out = relu((A @ z) * norm + bias)
# grid = (dst-row tiles ["parallel"], src-node reduction tiles ["arbitrary"])
# ----------------------------------------------------------------------------
def _agg_kernel(a_ref, z_ref, ndst_ref, b_ref, o_ref, acc_ref):
    k = pl.program_id(1)

    @pl.when(k == 0)
    def _():
        acc_ref[...] = jnp.zeros_like(acc_ref)

    acc_ref[...] += jnp.dot(a_ref[...], z_ref[...],
                            preferred_element_type=jnp.float32)

    @pl.when(k == pl.num_programs(1) - 1)
    def _():
        out = acc_ref[...] * ndst_ref[...] + b_ref[...]
        o_ref[...] = jnp.maximum(out, 0.0).astype(o_ref.dtype)   # ReLU; dropout = identity


# ----------------------------------------------------------------------------
# Tiling plan + one-time adjacency preparation (do NOT repeat per layer call)
# ----------------------------------------------------------------------------
def plan_tiles(n, tm=DEFAULT_TM, tk=DEFAULT_TK):
    assert tm % 128 == 0 and tk % 128 == 0
    n128 = _round_up(n, 128)
    tm = min(tm, n128)
    tk = min(tk, n128)
    # Keep >= 2 dst-row tiles when the graph allows it, so the "parallel" axis
    # actually shards across the two v7x TensorCores.
    while tm > 128 and n128 // tm < 2:
        tm -= 128
    n_p = _round_up(n, math.lcm(tm, tk))
    return tm, tk, n_p


def pad_adjacency(adj, n_p):
    """Pad + bf16-cast the O(N^2) adjacency once; reuse across layers/steps."""
    n = adj.shape[0]
    return jnp.zeros((n_p, n_p), jnp.bfloat16).at[:n, :n].set(adj.astype(jnp.bfloat16))


# ----------------------------------------------------------------------------
# Jitted forward over a pre-padded adjacency
# ----------------------------------------------------------------------------
@functools.partial(jax.jit, static_argnames=("tm", "tk", "out_dtype"))
def gcn_forward_padded(a_p, h, weight, bias, norm, *, tm, tk,
                       out_dtype=jnp.float32):
    n, din = h.shape
    dout = weight.shape[1]
    n_p = a_p.shape[0]
    din_p = _round_up(din, 128)
    dout_p = _round_up(dout, 128)
    out_bytes = jnp.dtype(out_dtype).itemsize

    # Cheap O(N*D) padding (zero padding is neutral: padded src rows / feature
    # cols contribute nothing; padded dst rows / out cols are sliced off).
    h_p = jnp.zeros((n_p, din_p), jnp.bfloat16).at[:n, :din].set(h.astype(jnp.bfloat16))
    w_p = jnp.zeros((din_p, dout_p), jnp.bfloat16).at[:din, :dout].set(
        weight.astype(jnp.bfloat16))
    b_p = jnp.zeros((1, dout_p), jnp.float32).at[0, :dout].set(bias.astype(jnp.float32))
    norm_p = jnp.zeros((n_p, 1), jnp.float32).at[:n, 0].set(norm.astype(jnp.float32))

    # --- kernel 1: z = ((h @ W) * norm) in bf16, computed exactly once -------
    z = pl.pallas_call(
        _proj_kernel,
        out_shape=jax.ShapeDtypeStruct((n_p, dout_p), jnp.bfloat16),
        grid_spec=pltpu.PrefetchScalarGridSpec(
            num_scalar_prefetch=0,
            grid=(n_p // tm,),
            in_specs=[
                pl.BlockSpec((tm, din_p), lambda i: (i, 0)),        # node features
                pl.BlockSpec((din_p, dout_p), lambda i: (0, 0)),    # weight (resident)
                pl.BlockSpec((tm, 1), lambda i: (i, 0)),            # src norm
            ],
            out_specs=pl.BlockSpec((tm, dout_p), lambda i: (i, 0)),
        ),
        compiler_params=pltpu.CompilerParams(
            dimension_semantics=("parallel",),
            vmem_limit_bytes=VMEM_LIMIT,
        ),
        cost_estimate=pl.CostEstimate(
            flops=2 * n_p * din_p * dout_p,
            transcendentals=0,
            bytes_accessed=2 * n_p * din_p + 2 * din_p * dout_p
                           + 2 * n_p * dout_p + 4 * n_p,
        ),
    )(h_p, w_p, norm_p)

    # --- kernel 2: out = relu((A @ z) * norm + bias) --------------------------
    grid = (n_p // tm, n_p // tk)
    out_p = pl.pallas_call(
        _agg_kernel,
        out_shape=jax.ShapeDtypeStruct((n_p, dout_p), out_dtype),
        grid_spec=pltpu.PrefetchScalarGridSpec(
            num_scalar_prefetch=0,
            grid=grid,
            in_specs=[
                pl.BlockSpec((tm, tk), lambda i, k: (i, k)),        # adjacency tile
                pl.BlockSpec((tk, dout_p), lambda i, k: (k, 0)),    # projected feats
                pl.BlockSpec((tm, 1), lambda i, k: (i, 0)),         # dst norm
                pl.BlockSpec((1, dout_p), lambda i, k: (0, 0)),     # bias (resident)
            ],
            out_specs=pl.BlockSpec((tm, dout_p), lambda i, k: (i, 0)),
            scratch_shapes=[pltpu.VMEM((tm, dout_p), jnp.float32)],
        ),
        compiler_params=pltpu.CompilerParams(
            dimension_semantics=("parallel", "arbitrary"),
            vmem_limit_bytes=VMEM_LIMIT,
        ),
        cost_estimate=pl.CostEstimate(
            flops=2 * n_p * n_p * dout_p,
            transcendentals=0,
            bytes_accessed=2 * n_p * n_p
                           + 2 * (n_p // tm) * n_p * dout_p
                           + out_bytes * n_p * dout_p,
        ),
    )(a_p, z, norm_p, b_p)

    return out_p[:n, :dout]


def gcn_layer(h, weight, bias, adj, norm, *, tm=DEFAULT_TM, tk=DEFAULT_TK,
              out_dtype=jnp.float32):
    """One-shot convenience wrapper (pads adjacency itself)."""
    tm, tk, n_p = plan_tiles(h.shape[0], tm, tk)
    a_p = pad_adjacency(adj, n_p)
    return gcn_forward_padded(a_p, h, weight, bias, norm, tm=tm, tk=tk,
                              out_dtype=out_dtype)


def gcn_layer_ref(h, weight, bias, adj, norm):
    # pure-JAX f32 reference of the same forward
    z = (h @ weight) * norm[:, None]
    m = adj @ z
    return jnp.maximum(m * norm[:, None] + bias, 0.0)


if __name__ == "__main__":
    key = jax.random.PRNGKey(0)
    k_h, k_w, k_b, k_a, k_e = jax.random.split(key, 5)

    N, DIN, DOUT = 200, 48, 64

    h = jax.random.normal(k_h, (N, DIN), jnp.float32)
    stdv = 1.0 / math.sqrt(DOUT)                      # GCNLayer.reset_parameters()
    weight = jax.random.uniform(k_w, (DIN, DOUT), jnp.float32, -stdv, stdv)
    bias = jax.random.uniform(k_b, (DOUT,), jnp.float32, -stdv, stdv)

    # Random sparse graph as dense weighted adjacency: adj[dst, src] = edge weight.
    edge_mask = jax.random.bernoulli(k_a, 0.05, (N, N)).astype(jnp.float32)
    edge_w = jax.random.uniform(k_e, (N, N), jnp.float32, 0.5, 1.5)
    adj = edge_mask * edge_w

    # Per-node GCN normalizer: 1/sqrt(in-degree), 0 for isolated nodes.
    deg = jnp.sum(edge_mask, axis=1)
    norm = jnp.where(deg > 0, 1.0 / jnp.sqrt(jnp.maximum(deg, 1.0)), 0.0)

    # Plan tiles and pad/cast the O(N^2) adjacency ONCE (reused across layers).
    tm, tk, n_p = plan_tiles(N)
    a_p = jax.block_until_ready(pad_adjacency(adj, n_p))

    out = gcn_forward_padded(a_p, h, weight, bias, norm, tm=tm, tk=tk)
    jax.block_until_ready(out)

    ref = gcn_layer_ref(h, weight, bias, adj, norm)
    assert out.shape == (N, DOUT)
    assert bool(jnp.all(jnp.isfinite(out)))
    # bf16 matmul operands with f32 accumulation -> loose tolerance vs f32 ref.
    rel_err = float(jnp.max(jnp.abs(out - ref)) / (jnp.max(jnp.abs(ref)) + 1e-6))
    assert rel_err < 5e-2, rel_err

    print("KERNEL_OK")
</pallas_src>

<mosaic_0001>
module attributes {stable_mosaic.version = 11 : i64} {
  func.func @_proj_kernel(%arg0: i32, %arg1: memref<128x128xbf16, #tpu.memory_space<vmem>>, %arg2: memref<128x128xbf16, #tpu.memory_space<vmem>>, %arg3: memref<128x1xf32, #tpu.memory_space<vmem>>, %arg4: memref<128x128xbf16, #tpu.memory_space<vmem>>) attributes {dimension_semantics = [#tpu.dimension_semantics<parallel>], iteration_bounds = array<i64: 2>, scalar_prefetch = 0 : i64, scratch_operands = 0 : i64, tpu.core_type = #tpu.core_type<tc>, window_params = [{transform_indices = @transform_0, window_bounds = array<i64: 128, 128>}, {pipeline_mode = #tpu.pipeline_mode<synchronous>, transform_indices = @transform_1, window_bounds = array<i64: 128, 128>}, {transform_indices = @transform_2, window_bounds = array<i64: 128, 1>}, {transform_indices = @transform_3, window_bounds = array<i64: 128, 128>}]} {
    %c0 = arith.constant 0 : index
    %c0_0 = arith.constant 0 : index
    %0 = vector.load %arg1[%c0, %c0_0] : memref<128x128xbf16, #tpu.memory_space<vmem>>, vector<128x128xbf16>
    %c0_1 = arith.constant 0 : index
    %c0_2 = arith.constant 0 : index
    %1 = vector.load %arg2[%c0_1, %c0_2] : memref<128x128xbf16, #tpu.memory_space<vmem>>, vector<128x128xbf16>
    %cst = arith.constant dense<0.000000e+00> : vector<128x128xf32>
    %2 = tpu.matmul %0, %1, %cst {dimension_numbers = #tpu.dot_dimension_numbers<[1], [0], [0], [1], [0, 0, 1, 1], [], []>} : vector<128x128xbf16>, vector<128x128xbf16>, vector<128x128xf32> -> vector<128x128xf32>
    %c0_3 = arith.constant 0 : index
    %c0_4 = arith.constant 0 : index
    %3 = vector.load %arg3[%c0_3, %c0_4] : memref<128x1xf32, #tpu.memory_space<vmem>>, vector<128x1xf32>
    %4 = vector.broadcast %3 : vector<128x1xf32> to vector<128x128xf32>
    %5 = arith.mulf %2, %4 : vector<128x128xf32>
    %6 = arith.truncf %5 : vector<128x128xf32> to vector<128x128xbf16>
    %c0_5 = arith.constant 0 : index
    %c0_6 = arith.constant 0 : index
    %7 = vector.load %arg4[%c0_5, %c0_6] : memref<128x128xbf16, #tpu.memory_space<vmem>>, vector<128x128xbf16>
    tpu.vector_store %arg4[%c0_5, %c0_6], %6 {strides = array<i32>} : memref<128x128xbf16, #tpu.memory_space<vmem>>, vector<128x128xbf16>,
    return
  }
  func.func @transform_0(%arg0: i32) -> (i32, i32) {
    %c0_i32 = arith.constant 0 : i32
    %c0_i32_0 = arith.constant 0 : i32
    return %arg0, %c0_i32 : i32, i32
  }
  func.func @transform_1(%arg0: i32) -> (i32, i32) {
    %c0_i32 = arith.constant 0 : i32
    %c0_i32_0 = arith.constant 0 : i32
    %c0_i32_1 = arith.constant 0 : i32
    return %c0_i32, %c0_i32_0 : i32, i32
  }
  func.func @transform_2(%arg0: i32) -> (i32, i32) {
    %c0_i32 = arith.constant 0 : i32
    %c0_i32_0 = arith.constant 0 : i32
    return %arg0, %c0_i32 : i32, i32
  }
  func.func @transform_3(%arg0: i32) -> (i32, i32) {
    %c0_i32 = arith.constant 0 : i32
    %c0_i32_0 = arith.constant 0 : i32
    return %arg0, %c0_i32 : i32, i32
  }
}

module attributes {stable_mosaic.version = 11 : i64} {
  func.func @_agg_kernel(%arg0: i32, %arg1: i32, %arg2: memref<128x256xbf16, #tpu.memory_space<vmem>>, %arg3: memref<256x128xbf16, #tpu.memory_space<vmem>>, %arg4: memref<128x1xf32, #tpu.memory_space<vmem>>, %arg5: memref<1x128xf32, #tpu.memory_space<vmem>>, %arg6: memref<128x128xf32, #tpu.memory_space<vmem>>, %arg7: memref<128x128xf32, #tpu.memory_space<vmem>>) attributes {dimension_semantics = [#tpu.dimension_semantics<parallel>, #tpu.dimension_semantics<arbitrary>], iteration_bounds = array<i64: 2, 1>, scalar_prefetch = 0 : i64, scratch_operands = 1 : i64, tpu.core_type = #tpu.core_type<tc>, window_params = [{transform_indices = @transform_0, window_bounds = array<i64: 128, 256>}, {transform_indices = @transform_1, window_bounds = array<i64: 256, 128>}, {transform_indices = @transform_2, window_bounds = array<i64: 128, 1>}, {pipeline_mode = #tpu.pipeline_mode<synchronous>, transform_indices = @transform_3, window_bounds = array<i64: 1, 128>}, {transform_indices = @transform_4, window_bounds = array<i64: 128, 128>}]} {
    %c0_i32 = arith.constant 0 : i32
    %0 = arith.cmpi eq, %arg1, %c0_i32 : i32
    %1 = arith.extui %0 : i1 to i32
    %c0_i32_0 = arith.constant 0 : i32
    %2 = arith.cmpi ne, %1, %c0_i32_0 : i32
    scf.if %2 {
      %cst_10 = arith.constant 0.000000e+00 : f32
      %12 = vector.broadcast %cst_10 : f32 to vector<128x128xf32>
      %c0_11 = arith.constant 0 : index
      %c0_12 = arith.constant 0 : index
      %13 = vector.load %arg7[%c0_11, %c0_12] : memref<128x128xf32, #tpu.memory_space<vmem>>, vector<128x128xf32>
      tpu.vector_store %arg7[%c0_11, %c0_12], %12 {strides = array<i32>} : memref<128x128xf32, #tpu.memory_space<vmem>>, vector<128x128xf32>,
    } else {
    }
    %c0 = arith.constant 0 : index
    %c0_1 = arith.constant 0 : index
    %3 = vector.load %arg7[%c0, %c0_1] : memref<128x128xf32, #tpu.memory_space<vmem>>, vector<128x128xf32>
    %c0_2 = arith.constant 0 : index
    %c0_3 = arith.constant 0 : index
    %4 = vector.load %arg2[%c0_2, %c0_3] : memref<128x256xbf16, #tpu.memory_space<vmem>>, vector<128x256xbf16>
    %c0_4 = arith.constant 0 : index
    %c0_5 = arith.constant 0 : index
    %5 = vector.load %arg3[%c0_4, %c0_5] : memref<256x128xbf16, #tpu.memory_space<vmem>>, vector<256x128xbf16>
    %cst = arith.constant dense<0.000000e+00> : vector<128x128xf32>
    %6 = tpu.matmul %4, %5, %cst {dimension_numbers = #tpu.dot_dimension_numbers<[1], [0], [0], [1], [0, 0, 1, 1], [], []>} : vector<128x256xbf16>, vector<256x128xbf16>, vector<128x128xf32> -> vector<128x128xf32>
    %7 = arith.addf %3, %6 : vector<128x128xf32>
    %c0_6 = arith.constant 0 : index
    %c0_7 = arith.constant 0 : index
    %8 = vector.load %arg7[%c0_6, %c0_7] : memref<128x128xf32, #tpu.memory_space<vmem>>, vector<128x128xf32>
    tpu.vector_store %arg7[%c0_6, %c0_7], %7 {strides = array<i32>} : memref<128x128xf32, #tpu.memory_space<vmem>>, vector<128x128xf32>,
    %c0_i32_8 = arith.constant 0 : i32
    %9 = arith.cmpi eq, %arg1, %c0_i32_8 : i32
    %10 = arith.extui %9 : i1 to i32
    %c0_i32_9 = arith.constant 0 : i32
    %11 = arith.cmpi ne, %10, %c0_i32_9 : i32
    scf.if %11 {
      %c0_10 = arith.constant 0 : index
      %c0_11 = arith.constant 0 : index
      %12 = vector.load %arg7[%c0_10, %c0_11] : memref<128x128xf32, #tpu.memory_space<vmem>>, vector<128x128xf32>
      %c0_12 = arith.constant 0 : index
      %c0_13 = arith.constant 0 : index
      %13 = vector.load %arg4[%c0_12, %c0_13] : memref<128x1xf32, #tpu.memory_space<vmem>>, vector<128x1xf32>
      %14 = vector.broadcast %13 : vector<128x1xf32> to vector<128x128xf32>
      %15 = arith.mulf %12, %14 : vector<128x128xf32>
      %c0_14 = arith.constant 0 : index
      %c0_15 = arith.constant 0 : index
      %16 = vector.load %arg5[%c0_14, %c0_15] : memref<1x128xf32, #tpu.memory_space<vmem>>, vector<1x128xf32>
      %17 = vector.broadcast %16 : vector<1x128xf32> to vector<128x128xf32>
      %18 = arith.addf %15, %17 : vector<128x128xf32>
      %cst_16 = arith.constant 0.000000e+00 : f32
      %19 = vector.broadcast %cst_16 : f32 to vector<128x128xf32>
      %20 = arith.maximumf %18, %19 : vector<128x128xf32>
      %c0_17 = arith.constant 0 : index
      %c0_18 = arith.constant 0 : index
      %21 = vector.load %arg6[%c0_17, %c0_18] : memref<128x128xf32, #tpu.memory_space<vmem>>, vector<128x128xf32>
      tpu.vector_store %arg6[%c0_17, %c0_18], %20 {strides = array<i32>} : memref<128x128xf32, #tpu.memory_space<vmem>>, vector<128x128xf32>,
    } else {
    }
    return
  }
  func.func @transform_0(%arg0: i32, %arg1: i32) -> (i32, i32) {
    %c0_i32 = arith.constant 0 : i32
    return %arg0, %arg1 : i32, i32
  }
  func.func @transform_1(%arg0: i32, %arg1: i32) -> (i32, i32) {
    %c0_i32 = arith.constant 0 : i32
    %c0_i32_0 = arith.constant 0 : i32
    return %arg1, %c0_i32 : i32, i32
  }
  func.func @transform_2(%arg0: i32, %arg1: i32) -> (i32, i32) {
    %c0_i32 = arith.constant 0 : i32
    %c0_i32_0 = arith.constant 0 : i32
    return %arg0, %c0_i32 : i32, i32
  }
  func.func @transform_3(%arg0: i32, %arg1: i32) -> (i32, i32) {
    %c0_i32 = arith.constant 0 : i32
    %c0_i32_0 = arith.constant 0 : i32
    %c0_i32_1 = arith.constant 0 : i32
    return %c0_i32, %c0_i32_0 : i32, i32
  }
  func.func @transform_4(%arg0: i32, %arg1: i32) -> (i32, i32) {
    %c0_i32 = arith.constant 0 : i32
    %c0_i32_0 = arith.constant 0 : i32
    return %arg0, %c0_i32 : i32, i32
  }
}

</mosaic_0001>

<bundles_post_ra>
// kernel: gcn_forward_padded.2
= control target key start
LH: loop header
LB: loop body
LE: loop exit
PB: predicated region body
PF: predicated region fallthrough
CT: control target
= control target key end

     0   :  { %s910_s12 = smov 0   ;;  %s1000_s0 = inlined_call_operand.vmem [shape: bf16[256,128], index: 0, kind: input, shape index: {}]   ;;  %s1001_s1 = inlined_call_operand.vmem [shape: bf16[128,128], index: 1, kind: input, shape index: {}]   ;;  %s1002_s2 = inlined_call_operand.vmem [shape: f32[256,1], index: 2, kind: input, shape index: {}]   ;;  %s1003_s3 = inlined_call_operand.vmem [shape: bf16[256,128], index: 3, kind: output, shape index: {}]  }
   0x1 LB: > { %s682_s13 = sadd.s32 4294967295, %s887_s12   ;;  %p686_p0 = scmp.ge.s32.totalorder %s887_s12, 1  ;;  %s887_s12 = sphi %s910_s12, %s13_s12  }
   0x2   : > { %p149_p1 = scmp.lt.s32.totalorder %s887_s12, 3 }
   0x4   : > { %p150_p2 = pnand %p686_p0, %p149_p1 }
   0x5   : > { %v865_v0 = vld [vmem:[%s1001_s1] sm:$0xff] (!%p150_p2)   ;;  %s687_s16 = sshll.u32 (!%p150_p2), %s682_s13, 4  ;;  %v866_v1 = vld [vmem:[%s1001_s1 + $0x8] sm:$0xff] (!%p150_p2)   ;;  %v867_v2 = vld [vmem:[%s1001_s1 + $0x10] sm:$0xff] (!%p150_p2)   ;;  %v889_v3 = vmov (!%p150_p2), 0  }
   0x6   : > { %153 = sbr.rel (%p150_p2) target bundleno = 266 (0x10a), region = 32  ;;  %p179_p3 = scmp.lt.s32.totalorder (!%p150_p2), %s687_s16, 31  ;;  %806 = vmatprep.subr.bf16.mxu0 (!%p150_p2), %v865_v0  ;;  %838 = vmatprep.subr.bf16.mxu1 (!%p150_p2), %v865_v0  ;;  %v868_v4 = vld [vmem:[%s1001_s1 + $0x18] sm:$0xff] (!%p150_p2)   ;;  %v869_v7 = vld [vmem:[%s1001_s1 + $0x20] sm:$0xff] (!%p150_p2)   ;;  %v870_v8 = vld [vmem:[%s1001_s1 + $0x28] sm:$0xff] (!%p150_p2)  }
   0x7   : > { %807 = vmatpush3.bf16.msra.mxu0 (!%p150_p2), %v865_v0  ;;  %846 = vmatpush3.bf16.msra.mxu1 (!%p150_p2), %v865_v0  ;;  %v871_v13 = vld [vmem:[%s1001_s1 + $0x30] sm:$0xff] (!%p150_p2)   ;;  %v872_v16 = vld [vmem:[%s1001_s1 + $0x38] sm:$0xff] (!%p150_p2)  }
   0x8   : > { %808 = vmatprep.subr.bf16.mxu0 (!%p150_p2), %v866_v1  ;;  %839 = vmatprep.subr.bf16.mxu1 (!%p150_p2), %v866_v1 }
   0x9   : > { %864 = vset.pattern.permute.xlu1 (!%p150_p2), %v889_v3  ;;  %863 = vset.pattern.permute.xlu0 (!%p150_p2), %v889_v3 }
   0xb   : > { %809 = vmatpush3.bf16.msra.mxu0 (!%p150_p2), %v866_v1  ;;  %847 = vmatpush3.bf16.msra.mxu1 (!%p150_p2), %v866_v1 }
   0xc   : > { %810 = vmatprep.subr.bf16.mxu0 (!%p150_p2), %v867_v2  ;;  %840 = vmatprep.subr.bf16.mxu1 (!%p150_p2), %v867_v2 }
   0xd   : > { %s1005_s16 = smov (!%p179_p3, %s687_s16), 31 }
   0xe   : > { %s688_s21 = sshll.u32 %s1005_s16, 2  ;;  %s690_s27 = sshll.u32 %s1005_s16, 3 }
   0xf   : > { %s935_s24 = scalar_lea.vmem %s1000_s0, %s688_s21  ;;  %811 = vmatpush3.bf16.msra.mxu0 %v867_v2  ;;  %848 = vmatpush3.bf16.msra.mxu1 %v867_v2  ;;  %s949_s5 = scalar_lea.vmem %s1002_s2, %s690_s27 }
  0x10   : > { %v873_v5 = vld [vmem:[%s935_s24] sm:$0xff]   ;;  %812 = vmatprep.subr.bf16.mxu0 %v868_v4  ;;  %841 = vmatprep.subr.bf16.mxu1 %v868_v4  ;;  %v424_v9 = vld [vmem:[%s949_s5 + $0x10] sm:$0xff]  ;;  %v425_v11 = vld [vmem:[%s949_s5 + $0x18] sm:$0xff]  ;;  %s987_s15 = scalar_lea.vmem %s1003_s3, %s688_s21 }
  0x11   : > { %v874_v6 = vld [vmem:[%s935_s24 + $0x20] sm:$0xff]   ;;  %822 = vmatprep.mubr.bf16.mxu0 %v873_v5  ;;  %450 = vperm.xlu1 %864, %v424_v9   ;;  %v423_v12 = vld [vmem:[%s949_s5 + $0x8] sm:$0xff]  ;;  %v429_v17 = vld [vmem:[%s949_s5 + $0x38] sm:$0xff] }
  0x12   : > { %830 = vmatprep.mubr.bf16.mxu1 %v874_v6  ;;  %v422_v10 = vld [vmem:[%s949_s5] sm:$0xff]  ;;  %v427_v14 = vld [vmem:[%s949_s5 + $0x28] sm:$0xff]  ;;  %v428_v18 = vld [vmem:[%s949_s5 + $0x30] sm:$0xff] }
  0x13   : > { %813 = vmatpush3.bf16.msra.mxu0 %v868_v4  ;;  %849 = vmatpush3.bf16.msra.mxu1 %v868_v4  ;;  %v426_v15 = vld [vmem:[%s949_s5 + $0x20] sm:$0xff]  ;;  %v875_v19 = vld [vmem:[%s935_s24 + $0x8] sm:$0xff]   ;;  %v877_v23 = vld [vmem:[%s935_s24 + $0x10] sm:$0xff]  }
  0x14   : > { %814 = vmatprep.subr.bf16.mxu0 %v869_v7  ;;  %842 = vmatprep.subr.bf16.mxu1 %v869_v7  ;;  %v876_v20 = vld [vmem:[%s935_s24 + $0x28] sm:$0xff]   ;;  %v430_v22 = vld [vmem:[%s949_s5 + $0x40] sm:$0xff]  ;;  %v878_v24 = vld [vmem:[%s935_s24 + $0x30] sm:$0xff]  }
  0x15   : > { %440 = vperm.xlu0 %863, %v422_v10   ;;  %455 = vperm.xlu1 %864, %v425_v11   ;;  %v431_v21 = vld [vmem:[%s949_s5 + $0x48] sm:$0xff]  ;;  %v433_v25 = vld [vmem:[%s949_s5 + $0x58] sm:$0xff]  ;;  %v432_v26 = vld [vmem:[%s949_s5 + $0x50] sm:$0xff] }
  0x16   : > { %v879_v27 = vld [vmem:[%s935_s24 + $0x18] sm:$0xff]   ;;  %v435_v29 = vld [vmem:[%s949_s5 + $0x68] sm:$0xff]  ;;  %v434_v30 = vld [vmem:[%s949_s5 + $0x60] sm:$0xff] }
  0x17   : > { %815 = vmatpush3.bf16.msra.mxu0 %v869_v7  ;;  %850 = vmatpush3.bf16.msra.mxu1 %v869_v7  ;;  %v880_v28 = vld [vmem:[%s935_s24 + $0x38] sm:$0xff]   ;;  %v436_v32 = vld [vmem:[%s949_s5 + $0x70] sm:$0xff] }
  0x18   : > { %816 = vmatprep.subr.bf16.mxu0 %v870_v8  ;;  %843 = vmatprep.subr.bf16.mxu1 %v870_v8  ;;  %v437_v31 = vld [vmem:[%s949_s5 + $0x78] sm:$0xff] }
  0x19   : > { %445 = vperm.xlu0 %863, %v423_v12   ;;  %465 = vperm.xlu1 %864, %v427_v14  }
  0x1b   : > { %817 = vmatpush3.bf16.msra.mxu0 %v870_v8  ;;  %851 = vmatpush3.bf16.msra.mxu1 %v870_v8 }
  0x1c   : > { %818 = vmatprep.subr.bf16.mxu0 %v871_v13  ;;  %844 = vmatprep.subr.bf16.mxu1 %v871_v13 }
  0x1d   : > { %460 = vperm.xlu0 %863, %v426_v15   ;;  %475 = vperm.xlu1 %864, %v429_v17  }
  0x1f   : > { %819 = vmatpush3.bf16.msra.mxu0 %v871_v13  ;;  %852 = vmatpush3.bf16.msra.mxu1 %v871_v13 }
  0x20   : > { %820 = vmatprep.subr.bf16.mxu0 %v872_v16  ;;  %845 = vmatprep.subr.bf16.mxu1 %v872_v16 }
  0x21   : > { %470 = vperm.xlu0 %863, %v428_v18   ;;  %485 = vperm.xlu1 %864, %v431_v21  }
  0x23   : > { %821 = vmatpush3.bf16.msra.mxu0 %v872_v16  ;;  %853 = vmatpush3.bf16.msra.mxu1 %v872_v16 }
  0x25   : > { %480 = vperm.xlu0 %863, %v430_v22   ;;  %495 = vperm.xlu1 %864, %v433_v25  }
  0x26   : > { %823 = vmatmul.mubr.bf16.vlgmr.msra.gmra.mrb[0].mxu0 %v875_v19  ;;  %831 = vmatmul.mubr.bf16.vlgmr.msra.gmra.mrb[0].mxu1 %v876_v20 }
  0x27   : > { %826 = vmatprep.mubr.bf16.mxu0 %v877_v23  ;;  %834 = vmatprep.mubr.bf16.mxu1 %v878_v24 }
  0x29   : > { %490 = vperm.xlu0 %863, %v432_v26   ;;  %505 = vperm.xlu1 %864, %v435_v29  }
  0x2d   : > { %500 = vperm.xlu0 %863, %v434_v30   ;;  %515 = vperm.xlu1 %864, %v437_v31  }
  0x2e   : > { %827 = vmatmul.mubr.bf16.gmra.mrb[4].mxu0 %v879_v27  ;;  %835 = vmatmul.mubr.bf16.gmra.mrb[4].mxu1 %v880_v28 }
  0x31   : > { %510 = vperm.xlu0 %863, %v436_v32  }
  0x90   : > { %v451_v33 = vpop.permute.xlu1 %450 }
  0x94   : > { %v441_v34 = vpop.permute.xlu0 %440  ;;  %v456_v35 = vpop.permute.xlu1 %455 }
  0x98   : > { %v446_v36 = vpop.permute.xlu0 %445  ;;  %v466_v37 = vpop.permute.xlu1 %465 }
  0x9c   : > { %v461_v38 = vpop.permute.xlu0 %460  ;;  %v476_v39 = vpop.permute.xlu1 %475 }
  0xa0   : > { %v471_v40 = vpop.permute.xlu0 %470  ;;  %v486_v41 = vpop.permute.xlu1 %485 }
  0xa4   : > { %v481_v42 = vpop.permute.xlu0 %480  ;;  %v496_v43 = vpop.permute.xlu1 %495 }
  0xa8   : > { %v491_v44 = vpop.permute.xlu0 %490  ;;  %v506_v45 = vpop.permute.xlu1 %505 }
  0xac   : > { %v501_v46 = vpop.permute.xlu0 %500  ;;  %v516_v3 = vpop.permute.xlu1 %515 }
  0xb0   : > { %v511_v4 = vpop.permute.xlu0 %510 }
  0xf9   : > { %v824_v47 = vpop.f32.mrb[0].mxu0  ;;  %v832_v48 = vpop.f32.mrb[0].mxu1 }
  0xfa   : > { %v359_v49 = vpop.f32.mrb[1].mxu0  ;;  %v391_v50 = vpop.f32.mrb[1].mxu1  ;;  %v520_v53 = vmul.f32 %v824_v47, %v451_v33  ;;  %v528_v54 = vmul.f32 %v832_v48, %v491_v44 }
  0xfb   : > { %v825_v51 = vpop.f32.mrb[2].mxu0  ;;  %v833_v52 = vpop.f32.mrb[2].mxu1  ;;  %v518_v59 = vmul.f32 %v441_v34, %v359_v49  ;;  %v526_v60 = vmul.f32 %v481_v42, %v391_v50 }
  0xfc   : > { %v521_v55 = vmul.f32 %v825_v51, %v456_v35  ;;  %v529_v56 = vmul.f32 %v833_v52, %v496_v43  ;;  %v362_v57 = vpop.f32.mrb[3].mxu0  ;;  %v394_v58 = vpop.f32.mrb[3].mxu1 }
  0xfd   : > { %v519_v61 = vmul.f32 %v446_v36, %v362_v57  ;;  %v527_v62 = vmul.f32 %v486_v41, %v394_v58 }
  0xfe   : > { %v751_v63 = vpack.c.bf16 %v521_v55, %v520_v53  ;;  %v771_v0 = vpack.c.bf16 %v529_v56, %v528_v54 }
  0xff   : > { %v746_v1 = vpack.c.bf16 %v519_v61, %v518_v59  ;;  %v766_v2 = vpack.c.bf16 %v527_v62, %v526_v60 }
 0x100   : > { %783 = vst [vmem:[%s987_s15 + $0x8] sm:$0xff] %v751_v63   ;;  %787 = vst [vmem:[%s987_s15 + $0x28] sm:$0xff] %v771_v0  }
 0x101   : > { %747 = vst [vmem:[%s987_s15] sm:$0xff] %v746_v1   ;;  %786 = vst [vmem:[%s987_s15 + $0x20] sm:$0xff] %v766_v2   ;;  %v828_v5 = vpop.f32.mrb[4].mxu0  ;;  %v836_v6 = vpop.f32.mrb[4].mxu1 }
 0x102   : > { %v375_v7 = vpop.f32.mrb[5].mxu0  ;;  %v407_v8 = vpop.f32.mrb[5].mxu1  ;;  %v524_v11 = vmul.f32 %v828_v5, %v471_v40  ;;  %v532_v12 = vmul.f32 %v836_v6, %v511_v4 }
 0x103   : > { %v829_v9 = vpop.f32.mrb[6].mxu0  ;;  %v837_v10 = vpop.f32.mrb[6].mxu1  ;;  %v522_v17 = vmul.f32 %v461_v38, %v375_v7  ;;  %v530_v18 = vmul.f32 %v501_v46, %v407_v8 }
 0x104   : > { %v525_v13 = vmul.f32 %v829_v9, %v476_v39  ;;  %v533_v14 = vmul.f32 %v837_v10, %v516_v3  ;;  %v378_v15 = vpop.f32.mrb[7].mxu0  ;;  %v410_v16 = vpop.f32.mrb[7].mxu1 }
 0x105   : > { %v523_v19 = vmul.f32 %v466_v37, %v378_v15  ;;  %v531_v20 = vmul.f32 %v506_v45, %v410_v16 }
 0x106   : > { %v761_v21 = vpack.c.bf16 %v525_v13, %v524_v11  ;;  %v781_v22 = vpack.c.bf16 %v533_v14, %v532_v12 }
 0x107   : > { %v756_v23 = vpack.c.bf16 %v523_v19, %v522_v17  ;;  %v776_v24 = vpack.c.bf16 %v531_v20, %v530_v18 }
 0x108   : > { %785 = vst [vmem:[%s987_s15 + $0x18] sm:$0xff] %v761_v21   ;;  %789 = vst [vmem:[%s987_s15 + $0x38] sm:$0xff] %v781_v22  }
 0x109   : > { %784 = vst [vmem:[%s987_s15 + $0x10] sm:$0xff] %v756_v23   ;;  %788 = vst [vmem:[%s987_s15 + $0x30] sm:$0xff] %v776_v24  }
 0x10a PF: > { %s13_s12 = sadd.s32 1, %s887_s12  }
 0x10b   : > { %p10_p4 = scmp.ge.s32.totalorder %s13_s12, 4  }
 0x10d   :  { %12 = sbr.rel (!%p10_p4) target bundleno = 1 (0x1), region = 65 }

// kernel: gcn_forward_padded.3
= control target key start
LH: loop header
LB: loop body
LE: loop exit
PB: predicated region body
PF: predicated region fallthrough
CT: control target
= control target key end

     0   :  { %s1196_s15 = smov 0   ;;  %s1198_s16 = smov 0   ;;  %s1375_s0 = inlined_call_operand.vmem [shape: bf16[256,256], index: 0, kind: input, shape index: {}]   ;;  %s1376_s1 = inlined_call_operand.vmem [shape: bf16[256,128], index: 1, kind: input, shape index: {}]   ;;  %s1377_s2 = inlined_call_operand.vmem [shape: f32[256,1], index: 2, kind: input, shape index: {}]   ;;  %s1378_s3 = inlined_call_operand.vmem [shape: f32[1,128], index: 3, kind: input, shape index: {}]   ;;  %s1379_s4 = inlined_call_operand.vmem [shape: f32[256,128], index: 4, kind: output, shape index: {}]  }
   0x1   :  { %s1200_s17 = smov 0  }
   0x2 LB: > { %s26_s18 = sadd.s32 1, %s1164_s16  ;;  %p955_p0 = scmp.ge.s32.totalorder %s1168_s17, 1  ;;  %s1168_s17 = sphi %s1200_s17, %s14_s17   ;;  %s1164_s16 = sphi %s1198_s16, %s1381_s16   ;;  %s1160_s15 = sphi %s1196_s15, %s1380_s15  }
   0x3   : > { %p28_p1 = scmp.ge.s32.totalorder %s26_s18, 2  ;;  %p205_p2 = scmp.lt.s32.totalorder %s1168_s17, 3 }
   0x5   : > { %s1383_s18 = smov (%p28_p1, %s26_s18), 0  ;;  %p206_p3 = pnand %p955_p0, %p205_p2 }
   0x6   : > { %v1106_v0 = vld [vmem:[%s1376_s1 + $0x40] sm:$0xff] (!%p206_p3)   ;;  %s956_s21 = sshll.u32 (!%p206_p3), %s1160_s15, 4  ;;  %v1108_v2 = vld [vmem:[%s1376_s1 + $0x48] sm:$0xff] (!%p206_p3)   ;;  %v1110_v4 = vld [vmem:[%s1376_s1 + $0x50] sm:$0xff] (!%p206_p3)   ;;  %v1170_v5 = vmov (!%p206_p3), 0  }
   0x7   : > { %209 = sbr.rel (%p206_p3) target bundleno = 288 (0x120), region = 36  ;;  %v1107_v1 = vld [vmem:[%s1376_s1] sm:$0xff] (!%p206_p3)   ;;  %999 = vmatprep.subr.bf16.mxu0 (!%p206_p3), %v1106_v0  ;;  %1063 = vmatprep.subr.bf16.mxu1 (!%p206_p3), %v1106_v0  ;;  %v1109_v3 = vld [vmem:[%s1376_s1 + $0x8] sm:$0xff] (!%p206_p3)   ;;  %p248_p4 = scmp.lt.s32.totalorder (!%p206_p3), %s956_s21, 31  ;;  %v1111_v6 = vld [vmem:[%s1376_s1 + $0x10] sm:$0xff] (!%p206_p3)  }
   0x8   : > { %1000 = vmatpush3.bf16.msra.mxu0 (!%p206_p3), %v1107_v1  ;;  %1071 = vmatpush3.bf16.msra.mxu1 (!%p206_p3), %v1107_v1  ;;  %v1112_v7 = vld [vmem:[%s1376_s1 + $0x58] sm:$0xff] (!%p206_p3)   ;;  %v1114_v9 = vld [vmem:[%s1376_s1 + $0x60] sm:$0xff] (!%p206_p3)   ;;  %v1116_v11 = vld [vmem:[%s1376_s1 + $0x68] sm:$0xff] (!%p206_p3)  }
   0x9   : > { %1001 = vmatprep.subr.bf16.mxu0 (!%p206_p3), %v1108_v2  ;;  %1064 = vmatprep.subr.bf16.mxu1 (!%p206_p3), %v1108_v2  ;;  %v1113_v8 = vld [vmem:[%s1376_s1 + $0x18] sm:$0xff] (!%p206_p3)   ;;  %v1115_v10 = vld [vmem:[%s1376_s1 + $0x20] sm:$0xff] (!%p206_p3)   ;;  %v1117_v14 = vld [vmem:[%s1376_s1 + $0x28] sm:$0xff] (!%p206_p3)  }
   0xa   : > { %1105 = vset.pattern.permute.xlu1 (!%p206_p3), %v1170_v5  ;;  %1104 = vset.pattern.permute.xlu0 (!%p206_p3), %v1170_v5  ;;  %v1118_v15 = vld [vmem:[%s1376_s1 + $0x70] sm:$0xff] (!%p206_p3)   ;;  %v1120_v17 = vld [vmem:[%s1376_s1 + $0x78] sm:$0xff] (!%p206_p3)   ;;  %v1322_v2 = vld [vmem:[%s1378_s3] ss:$0 sm:$0xff] (!%p206_p3) }
   0xb   : > { %v1119_v16 = vld [vmem:[%s1376_s1 + $0x30] sm:$0xff] (!%p206_p3)   ;;  %v1121_v19 = vld [vmem:[%s1376_s1 + $0x38] sm:$0xff] (!%p206_p3)  }
   0xc   : > { %1002 = vmatpush3.bf16.msra.mxu0 (!%p206_p3), %v1109_v3  ;;  %1072 = vmatpush3.bf16.msra.mxu1 (!%p206_p3), %v1109_v3 }
   0xd   : > { %1003 = vmatprep.subr.bf16.mxu0 (!%p206_p3), %v1110_v4  ;;  %1065 = vmatprep.subr.bf16.mxu1 (!%p206_p3), %v1110_v4 }
   0xe   : > { %s1385_s21 = smov (!%p248_p4, %s956_s21), 31 }
   0xf   : > { %s1241_s10 = sshll.u32 %s1385_s21, 3 }
  0x10   : > { %1004 = vmatpush3.bf16.msra.mxu0 %v1111_v6  ;;  %1073 = vmatpush3.bf16.msra.mxu1 %v1111_v6  ;;  %s1250_s15 = scalar_lea.vmem %s1375_s0, %s1241_s10  ;;  %s1273_s5 = scalar_lea.vmem %s1377_s2, %s1241_s10 }
  0x11   : > { %1005 = vmatprep.subr.bf16.mxu0 %v1112_v7  ;;  %1066 = vmatprep.subr.bf16.mxu1 %v1112_v7  ;;  %v1124_v12 = vld [vmem:[%s1250_s15 + $0x4] ss:$8 sps:$4 sm:$0xff]   ;;  %v687_v18 = vld [vmem:[%s1273_s5 + $0x10] sm:$0xff]  ;;  %v1122_v21 = vld [vmem:[%s1250_s15] ss:$8 sps:$4 sm:$0xff]  }
  0x12   : > { %v1127_v13 = vld [vmem:[%s1250_s15 + $0x44] ss:$8 sps:$4 sm:$0xff]   ;;  %569 = vmatprep.mubr.bf16.mxu0 %v1124_v12  ;;  %713 = vperm.xlu1 %1105, %v687_v18   ;;  %v1125_v22 = vld [vmem:[%s1250_s15 + $0x40] ss:$8 sps:$4 sm:$0xff]   ;;  %v688_v23 = vld [vmem:[%s1273_s5 + $0x18] sm:$0xff] }
  0x13   : > { %601 = vmatprep.mubr.bf16.mxu1 %v1127_v13  ;;  %v685_v20 = vld [vmem:[%s1273_s5] sm:$0xff]  ;;  %v686_v24 = vld [vmem:[%s1273_s5 + $0x8] sm:$0xff]  ;;  %v1128_v25 = vld [vmem:[%s1250_s15 + $0x14] ss:$8 sps:$4 sm:$0xff]  }
  0x14   : > { %1006 = vmatpush3.bf16.msra.mxu0 %v1113_v8  ;;  %1074 = vmatpush3.bf16.msra.mxu1 %v1113_v8  ;;  %v1130_v26 = vld [vmem:[%s1250_s15 + $0x54] ss:$8 sps:$4 sm:$0xff]   ;;  %v690_v27 = vld [vmem:[%s1273_s5 + $0x28] sm:$0xff]  ;;  %v689_v28 = vld [vmem:[%s1273_s5 + $0x20] sm:$0xff] }
  0x15   : > { %1007 = vmatprep.subr.bf16.mxu0 %v1114_v9  ;;  %1067 = vmatprep.subr.bf16.mxu1 %v1114_v9  ;;  %v1132_v29 = vld [vmem:[%s1250_s15 + $0x10] ss:$8 sps:$4 sm:$0xff]   ;;  %v1134_v33 = vld [vmem:[%s1250_s15 + $0x24] ss:$8 sps:$4 sm:$0xff]   ;;  %v1138_v37 = vld [vmem:[%s1250_s15 + $0x20] ss:$8 sps:$4 sm:$0xff]  }
  0x16   : > { %703 = vperm.xlu0 %1104, %v685_v20   ;;  %718 = vperm.xlu1 %1105, %v688_v23   ;;  %v1133_v30 = vld [vmem:[%s1250_s15 + $0x50] ss:$8 sps:$4 sm:$0xff]   ;;  %v1136_v34 = vld [vmem:[%s1250_s15 + $0x64] ss:$8 sps:$4 sm:$0xff]   ;;  %v1139_v38 = vld [vmem:[%s1250_s15 + $0x60] ss:$8 sps:$4 sm:$0xff]  }
  0x17   : > { %v692_v31 = vld [vmem:[%s1273_s5 + $0x38] sm:$0xff]  ;;  %v691_v32 = vld [vmem:[%s1273_s5 + $0x30] sm:$0xff]  ;;  %v694_v35 = vld [vmem:[%s1273_s5 + $0x48] sm:$0xff] }
  0x18   : > { %1008 = vmatpush3.bf16.msra.mxu0 %v1115_v10  ;;  %1075 = vmatpush3.bf16.msra.mxu1 %v1115_v10  ;;  %v693_v36 = vld [vmem:[%s1273_s5 + $0x40] sm:$0xff]  ;;  %v696_v39 = vld [vmem:[%s1273_s5 + $0x58] sm:$0xff]  ;;  %v695_v40 = vld [vmem:[%s1273_s5 + $0x50] sm:$0xff] }
  0x19   : > { %1009 = vmatprep.subr.bf16.mxu0 %v1116_v11  ;;  %1068 = vmatprep.subr.bf16.mxu1 %v1116_v11  ;;  %v1140_v41 = vld [vmem:[%s1250_s15 + $0x34] ss:$8 sps:$4 sm:$0xff]   ;;  %v698_v43 = vld [vmem:[%s1273_s5 + $0x68] sm:$0xff]  ;;  %v697_v44 = vld [vmem:[%s1273_s5 + $0x60] sm:$0xff] }
  0x1a   : > { %708 = vperm.xlu0 %1104, %v686_v24   ;;  %728 = vperm.xlu1 %1105, %v690_v27   ;;  %v1142_v42 = vld [vmem:[%s1250_s15 + $0x74] ss:$8 sps:$4 sm:$0xff]   ;;  %v1144_v45 = vld [vmem:[%s1250_s15 + $0x30] ss:$8 sps:$4 sm:$0xff]  }
  0x1b   : > { %v1145_v46 = vld [vmem:[%s1250_s15 + $0x70] ss:$8 sps:$4 sm:$0xff]   ;;  %s1330_s15 = scalar_lea.vmem %s1379_s4, %s1241_s10 }
  0x1c   : > { %1010 = vmatpush3.bf16.msra.mxu0 %v1117_v14  ;;  %1076 = vmatpush3.bf16.msra.mxu1 %v1117_v14  ;;  %v700_v47 = vld [vmem:[%s1273_s5 + $0x78] sm:$0xff]  ;;  %v699_v48 = vld [vmem:[%s1273_s5 + $0x70] sm:$0xff] }
  0x1d   : > { %1011 = vmatprep.subr.bf16.mxu0 %v1118_v15  ;;  %1069 = vmatprep.subr.bf16.mxu1 %v1118_v15 }
  0x1e   : > { %723 = vperm.xlu0 %1104, %v689_v28   ;;  %738 = vperm.xlu1 %1105, %v692_v31  }
  0x20   : > { %1012 = vmatpush3.bf16.msra.mxu0 %v1119_v16  ;;  %1077 = vmatpush3.bf16.msra.mxu1 %v1119_v16 }
  0x21   : > { %1013 = vmatprep.subr.bf16.mxu0 %v1120_v17  ;;  %1070 = vmatprep.subr.bf16.mxu1 %v1120_v17 }
  0x22   : > { %733 = vperm.xlu0 %1104, %v691_v32   ;;  %748 = vperm.xlu1 %1105, %v694_v35  }
  0x24   : > { %1014 = vmatpush3.bf16.msra.mxu0 %v1121_v19  ;;  %1078 = vmatpush3.bf16.msra.mxu1 %v1121_v19 }
  0x26   : > { %743 = vperm.xlu0 %1104, %v693_v36   ;;  %758 = vperm.xlu1 %1105, %v696_v39  }
  0x27   : > { %570 = vmatmul.mubr.bf16.vlgmr.msra.gmra.mrb[0].mxu0 %v1122_v21  ;;  %602 = vmatmul.mubr.bf16.vlgmr.msra.gmra.mrb[0].mxu1 %v1125_v22 }
  0x28   : > { %577 = vmatprep.mubr.bf16.mxu0 %v1128_v25  ;;  %609 = vmatprep.mubr.bf16.mxu1 %v1130_v26 }
  0x2a   : > { %753 = vperm.xlu0 %1104, %v695_v40   ;;  %768 = vperm.xlu1 %1105, %v698_v43  }
  0x2e   : > { %763 = vperm.xlu0 %1104, %v697_v44   ;;  %778 = vperm.xlu1 %1105, %v700_v47  }
  0x2f   : > { %578 = vmatmul.mubr.bf16.gmra.mrb[4].mxu0 %v1132_v29  ;;  %610 = vmatmul.mubr.bf16.gmra.mrb[4].mxu1 %v1133_v30 }
  0x30   : > { %585 = vmatprep.mubr.bf16.mxu0 %v1134_v33  ;;  %617 = vmatprep.mubr.bf16.mxu1 %v1136_v34 }
  0x32   : > { %773 = vperm.xlu0 %1104, %v699_v48  }
  0x37   : > { %586 = vmatmul.mubr.bf16.gmra.mrb[8].mxu0 %v1138_v37  ;;  %618 = vmatmul.mubr.bf16.gmra.mrb[8].mxu1 %v1139_v38 }
  0x38   : > { %593 = vmatprep.mubr.bf16.mxu0 %v1140_v41  ;;  %625 = vmatprep.mubr.bf16.mxu1 %v1142_v42 }
  0x3f   : > { %594 = vmatmul.mubr.bf16.gmra.mrb[12].mxu0 %v1144_v45  ;;  %626 = vmatmul.mubr.bf16.gmra.mrb[12].mxu1 %v1145_v46 }
  0x91   : > { %v714_v50 = vpop.permute.xlu1 %713 }
  0x95   : > { %v704_v49 = vpop.permute.xlu0 %703  ;;  %v719_v52 = vpop.permute.xlu1 %718 }
  0x99   : > { %v709_v51 = vpop.permute.xlu0 %708  ;;  %v1313_v54 = vpop.permute.xlu1 %728 }
  0x9d   : > { %v1311_v53 = vpop.permute.xlu0 %723  ;;  %v1317_v56 = vpop.permute.xlu1 %738 }
  0xa1   : > { %v1315_v55 = vpop.permute.xlu0 %733  ;;  %v749_v9 = vpop.permute.xlu1 %748 }
  0xa5   : > { %v744_v57 = vpop.permute.xlu0 %743  ;;  %v759_v35 = vpop.permute.xlu1 %758 }
  0xa9   : > { %v754_v14 = vpop.permute.xlu0 %753 }
  0xad   : > { %v764_v40 = vpop.permute.xlu0 %763 }
  0xfa   : > { %v1015_v58 = vpop.f32.mrb[0].mxu0  ;;  %v1039_v59 = vpop.f32.mrb[0].mxu1 }
  0xfb   : > { %v1016_v60 = vpop.f32.mrb[1].mxu0  ;;  %v1040_v61 = vpop.f32.mrb[1].mxu1 }
  0xfc   : > { %v1017_v62 = vadd.f32 %v1016_v60, %v1015_v58  ;;  %v1041_v63 = vadd.f32 %v1040_v61, %v1039_v59  ;;  %v1018_v0 = vpop.f32.mrb[2].mxu0  ;;  %v1042_v1 = vpop.f32.mrb[2].mxu1 }
  0xfd   : > { %v1019_v3 = vpop.f32.mrb[3].mxu0  ;;  %v1043_v4 = vpop.f32.mrb[3].mxu1 }
  0xfe   : > { %v781_v5 = vmul.f32 %v1017_v62, %v704_v49  ;;  %v789_v6 = vmul.f32 %v1041_v63, %v744_v57  ;;  %v1020_v7 = vadd.f32 %v1019_v3, %v1018_v0  ;;  %v1044_v8 = vadd.f32 %v1043_v4, %v1042_v1  ;;  %v769_v1 = vpop.permute.xlu1 %768 }
 0x100   : > { %v804_v10 = vadd.f32 %v1322_v2, %v781_v5  ;;  %v812_v11 = vadd.f32 %v1322_v2, %v789_v6  ;;  %v782_v12 = vmul.f32 %v1020_v7, %v709_v51  ;;  %v790_v13 = vmul.f32 %v1044_v8, %v749_v9  ;;  %v774_v7 = vpop.permute.xlu0 %773 }
 0x102   : > { %v820_v15 = vmax.f32 %v804_v10, 0.0  ;;  %v828_v16 = vmax.f32 %v812_v11, 0.0  ;;  %v805_v17 = vadd.f32 %v1322_v2, %v782_v12  ;;  %v813_v18 = vadd.f32 %v1322_v2, %v790_v13  ;;  %v1021_v19 = vpop.f32.mrb[4].mxu0  ;;  %v1045_v20 = vpop.f32.mrb[4].mxu1 }
 0x103   : > { %v1022_v21 = vpop.f32.mrb[5].mxu0  ;;  %v1046_v22 = vpop.f32.mrb[5].mxu1 }
 0x104   : > { %836 = vst [vmem:[%s1330_s15] sm:$0xff] %v820_v15  ;;  %844 = vst [vmem:[%s1330_s15 + $0x40] sm:$0xff] %v828_v16  ;;  %v821_v23 = vmax.f32 %v805_v17, 0.0  ;;  %v829_v24 = vmax.f32 %v813_v18, 0.0  ;;  %v1023_v25 = vadd.f32 %v1022_v21, %v1021_v19  ;;  %v1047_v26 = vadd.f32 %v1046_v22, %v1045_v20  ;;  %v1024_v27 = vpop.f32.mrb[6].mxu0  ;;  %v1048_v28 = vpop.f32.mrb[6].mxu1 }
 0x105   : > { %v1025_v29 = vpop.f32.mrb[7].mxu0  ;;  %v1049_v30 = vpop.f32.mrb[7].mxu1 }
 0x106   : > { %837 = vst [vmem:[%s1330_s15 + $0x8] sm:$0xff] %v821_v23  ;;  %845 = vst [vmem:[%s1330_s15 + $0x48] sm:$0xff] %v829_v24  ;;  %v783_v31 = vmul.f32 %v1023_v25, %v714_v50  ;;  %v791_v32 = vmul.f32 %v1047_v26, %v754_v14  ;;  %v1026_v33 = vadd.f32 %v1025_v29, %v1024_v27  ;;  %v779_v26 = vpop.permute.xlu1 %778 }
 0x107   : > { %v1050_v34 = vadd.f32 %v1049_v30, %v1048_v28 }
 0x108   : > { %v806_v36 = vadd.f32 %v1322_v2, %v783_v31  ;;  %v814_v37 = vadd.f32 %v1322_v2, %v791_v32  ;;  %v784_v38 = vmul.f32 %v1026_v33, %v719_v52 }
 0x109   : > { %v792_v39 = vmul.f32 %v1050_v34, %v759_v35 }
 0x10a   : > { %v822_v41 = vmax.f32 %v806_v36, 0.0  ;;  %v830_v42 = vmax.f32 %v814_v37, 0.0  ;;  %v807_v43 = vadd.f32 %v1322_v2, %v784_v38  ;;  %v1027_v45 = vpop.f32.mrb[8].mxu0  ;;  %v1051_v46 = vpop.f32.mrb[8].mxu1 }
 0x10b   : > { %v815_v44 = vadd.f32 %v1322_v2, %v792_v39  ;;  %v1028_v47 = vpop.f32.mrb[9].mxu0  ;;  %v1052_v48 = vpop.f32.mrb[9].mxu1 }
 0x10c   : > { %838 = vst [vmem:[%s1330_s15 + $0x10] sm:$0xff] %v822_v41  ;;  %846 = vst [vmem:[%s1330_s15 + $0x50] sm:$0xff] %v830_v42  ;;  %v823_v49 = vmax.f32 %v807_v43, 0.0  ;;  %v1029_v51 = vadd.f32 %v1028_v47, %v1027_v45  ;;  %v1053_v52 = vadd.f32 %v1052_v48, %v1051_v46  ;;  %v1030_v57 = vpop.f32.mrb[10].mxu0  ;;  %v1054_v58 = vpop.f32.mrb[10].mxu1 }
 0x10d   : > { %v831_v50 = vmax.f32 %v815_v44, 0.0  ;;  %v1031_v59 = vpop.f32.mrb[11].mxu0  ;;  %v1055_v60 = vpop.f32.mrb[11].mxu1 }
 0x10e   : > { %839 = vst [vmem:[%s1330_s15 + $0x18] sm:$0xff] %v823_v49  ;;  %v785_v61 = vmul.f32 %v1029_v51, %v1311_v53  ;;  %v793_v62 = vmul.f32 %v1053_v52, %v764_v40  ;;  %v1032_v63 = vadd.f32 %v1031_v59, %v1030_v57  ;;  %v1056_v0 = vadd.f32 %v1055_v60, %v1054_v58 }
 0x10f   : > { %847 = vst [vmem:[%s1330_s15 + $0x58] sm:$0xff] %v831_v50 }
 0x110   : > { %v808_v3 = vadd.f32 %v1322_v2, %v785_v61  ;;  %v816_v4 = vadd.f32 %v1322_v2, %v793_v62  ;;  %v786_v5 = vmul.f32 %v1032_v63, %v1313_v54  ;;  %v794_v6 = vmul.f32 %v1056_v0, %v769_v1 }
 0x112   : > { %v824_v8 = vmax.f32 %v808_v3, 0.0  ;;  %v832_v9 = vmax.f32 %v816_v4, 0.0  ;;  %v809_v10 = vadd.f32 %v1322_v2, %v786_v5  ;;  %v817_v53 = vadd.f32 %v1322_v2, %v794_v6  ;;  %v1033_v11 = vpop.f32.mrb[12].mxu0  ;;  %v1057_v12 = vpop.f32.mrb[12].mxu1 }
 0x113   : > { %v1034_v13 = vpop.f32.mrb[13].mxu0  ;;  %v1058_v14 = vpop.f32.mrb[13].mxu1 }
 0x114   : > { %840 = vst [vmem:[%s1330_s15 + $0x20] sm:$0xff] %v824_v8  ;;  %848 = vst [vmem:[%s1330_s15 + $0x60] sm:$0xff] %v832_v9  ;;  %v825_v15 = vmax.f32 %v809_v10, 0.0  ;;  %v833_v16 = vmax.f32 %v817_v53, 0.0  ;;  %v1035_v17 = vadd.f32 %v1034_v13, %v1033_v11  ;;  %v1059_v54 = vadd.f32 %v1058_v14, %v1057_v12  ;;  %v1036_v18 = vpop.f32.mrb[14].mxu0  ;;  %v1060_v19 = vpop.f32.mrb[14].mxu1 }
 0x115   : > { %v1037_v20 = vpop.f32.mrb[15].mxu0  ;;  %v1061_v21 = vpop.f32.mrb[15].mxu1 }
 0x116   : > { %841 = vst [vmem:[%s1330_s15 + $0x28] sm:$0xff] %v825_v15  ;;  %849 = vst [vmem:[%s1330_s15 + $0x68] sm:$0xff] %v833_v16  ;;  %v787_v22 = vmul.f32 %v1035_v17, %v1315_v55  ;;  %v795_v23 = vmul.f32 %v1059_v54, %v774_v7  ;;  %v1038_v24 = vadd.f32 %v1037_v20, %v1036_v18 }
 0x117   : > { %v1062_v25 = vadd.f32 %v1061_v21, %v1060_v19 }
 0x118   : > { %v810_v27 = vadd.f32 %v1322_v2, %v787_v22  ;;  %v818_v28 = vadd.f32 %v1322_v2, %v795_v23  ;;  %v788_v29 = vmul.f32 %v1038_v24, %v1317_v56 }
 0x119   : > { %v796_v30 = vmul.f32 %v1062_v25, %v779_v26 }
 0x11a   : > { %v826_v31 = vmax.f32 %v810_v27, 0.0  ;;  %v834_v32 = vmax.f32 %v818_v28, 0.0  ;;  %v811_v33 = vadd.f32 %v1322_v2, %v788_v29 }
 0x11b   : > { %v819_v34 = vadd.f32 %v1322_v2, %v796_v30 }
 0x11c   : > { %842 = vst [vmem:[%s1330_s15 + $0x30] sm:$0xff] %v826_v31  ;;  %850 = vst [vmem:[%s1330_s15 + $0x70] sm:$0xff] %v834_v32  ;;  %v827_v55 = vmax.f32 %v811_v33, 0.0 }
 0x11d   : > { %v835_v35 = vmax.f32 %v819_v34, 0.0 }
 0x11e   : > { %843 = vst [vmem:[%s1330_s15 + $0x38] sm:$0xff] %v827_v55 }
 0x11f   : > { %851 = vst [vmem:[%s1330_s15 + $0x78] sm:$0xff] %v835_v35 }
 0x120 PF: > { %s14_s17 = sadd.s32 1, %s1168_s17   ;;  %s1380_s15 = smov %s1164_s16 }
 0x121   : > { %p11_p5 = scmp.ge.s32.totalorder %s14_s17, 4   ;;  %s1381_s16 = smov %s1383_s18 }
 0x123   :  { %13 = sbr.rel (!%p11_p5) target bundleno = 2 (0x2), region = 80 }

</bundles_post_ra>
